<compile_context>
chip_gen: v6e
topology: v6e:2x2x1
jax: 0.10.0
libtpu: 0.0.40
codegen_flags: <defaults>
</compile_context>

<pallas_src>
import jax
import jax.numpy as jnp
from jax.experimental import pallas as pl
from jax.experimental.pallas import tpu as pltpu  # noqa: F401  (kept for scaling hooks below)


def rnn_kernel(x_ref, wih_ref, whh_ref, b_ref, out_ref, hn_ref):
    """Entire RNN forward in one invocation; everything resident in VMEM.

    x_ref:   (S*B, E)  time-major input (row block t*B:(t+1)*B is step t)
    wih_ref: (E, H)    W_ih^T
    whh_ref: (H, H)    W_hh^T
    b_ref:   (1, H)    fused bias (b_ih + b_hh)
    out_ref: (B, S*H)  lane-dense batch-first output slab (reshaped to (B,S,H) outside)
    hn_ref:  (B, H)    final hidden state
    """
    SB, E = x_ref.shape
    H = whh_ref.shape[0]
    B = out_ref.shape[0]
    S = SB // B

    whh = whh_ref[...]                              # (H, H), loaded once

    # One batched input projection for all S steps (no serial dependence on h,
    # so it sits entirely off the recurrence's critical path):
    #   xp[t*B:(t+1)*B, :] = x_t @ W_ih^T + (b_ih + b_hh)
    xp = (
        jnp.dot(x_ref[...], wih_ref[...], preferred_element_type=jnp.float32)
        + b_ref[...]                                # (1, H) broadcast, single add
    )                                               # (S*B, H) f32

    # t = 0: h_prev == 0, so the recurrent matmul is exactly zero -> skip it.
    h = jnp.tanh(xp[0:B, :])
    out_ref[:, 0:H] = h.astype(out_ref.dtype)

    # Serial recurrence, fully unrolled (S static & small); h stays in f32 vregs.
    for t in range(1, S):
        h = jnp.tanh(
            xp[t * B:(t + 1) * B, :]
            + jnp.dot(h, whh, preferred_element_type=jnp.float32)
        )
        # Per-step store into the lane-dense resident block (static offsets);
        # HBM writeback is one contiguous DMA of the whole (B, S*H) slab.
        out_ref[:, t * H:(t + 1) * H] = h.astype(out_ref.dtype)

    hn_ref[...] = h.astype(hn_ref.dtype)


@jax.jit
def vanilla_rnn_forward(x, w_ih, w_hh, b_ih, b_hh):
    """x: (B, S, E) -> (out (B, S, H), h_last (B, H)); matches nn.RNN(batch_first=True)."""
    B, S, E = x.shape
    H = w_ih.shape[0]

    # Time-major flatten so the kernel can do ONE batched input projection and
    # slice contiguous sublane row-blocks per step. Tiny (B*S*E elem) transpose
    # done once in XLA.
    x_tm = jnp.transpose(x, (1, 0, 2)).reshape(S * B, E)
    wih_t = jnp.transpose(w_ih)                 # (E, H)
    whh_t = jnp.transpose(w_hh)                 # (H, H)
    bias = (b_ih + b_hh).reshape(1, H)          # fused bias row

    out_flat, h_last = pl.pallas_call(
        rnn_kernel,
        out_shape=(
            jax.ShapeDtypeStruct((B, S * H), x.dtype),   # lane-dense output slab
            jax.ShapeDtypeStruct((B, H), x.dtype),        # final hidden state
        ),
        # Single invocation, no grid: all operands fit comfortably in VMEM at
        # these sizes on v5e/v6e/v7x.
        # TODO(synk): at large B, add a leading batch-parallel grid axis with
        # compiler_params=pltpu.CompilerParams(dimension_semantics=("parallel", ...))
        # so v7x's two TensorCores split the batch (only once per-core work
        # exceeds the ~0.35 us/step grid overhead).
        # TODO(synk): at large H, set pltpu.CompilerParams(vmem_limit_bytes=...)
        # against v7x's 64 MiB physical VMEM (not v6e's 128 MiB), move weights
        # to bf16 at the dots (keep h/tanh in f32), and block W_hh along K.
    )(x_tm, wih_t, whh_t, bias)

    out = out_flat.reshape(B, S, H)             # free view (H is the contiguous last dim)
    return out, h_last


def rnn_reference(x, w_ih, w_hh, b_ih, b_hh):
    """Pure-JAX reference matching torch.nn.RNN(batch_first=True)."""
    B = x.shape[0]
    H = w_ih.shape[0]
    h0 = jnp.zeros((B, H), x.dtype)

    def step(h, x_t):
        h_new = jnp.tanh(x_t @ w_ih.T + b_ih + h @ w_hh.T + b_hh)
        return h_new, h_new

    h_last, out_tm = jax.lax.scan(step, h0, jnp.transpose(x, (1, 0, 2)))
    return jnp.transpose(out_tm, (1, 0, 2)), h_last


if __name__ == "__main__":
    # Module hyperparameters (small, consistent with forward()).
    batch, seq, embed_dim, model_size, output_size = 2, 8, 8, 32, 4

    key = jax.random.PRNGKey(0)
    kx, k1, k2, k3, k4, k5, k6 = jax.random.split(key, 7)

    # Deterministic parameter init, PyTorch-style U(-1/sqrt(H), 1/sqrt(H)).
    bound = 1.0 / jnp.sqrt(jnp.float32(model_size))
    w_ih = jax.random.uniform(k1, (model_size, embed_dim), jnp.float32, -bound, bound)
    w_hh = jax.random.uniform(k2, (model_size, model_size), jnp.float32, -bound, bound)
    b_ih = jax.random.uniform(k3, (model_size,), jnp.float32, -bound, bound)
    b_hh = jax.random.uniform(k4, (model_size,), jnp.float32, -bound, bound)
    # self.fl parameters exist in the module but are unused in forward():
    fl_w = jax.random.uniform(k5, (output_size, model_size), jnp.float32, -bound, bound)
    fl_b = jax.random.uniform(k6, (output_size,), jnp.float32, -bound, bound)

    x = jax.random.normal(kx, (batch, seq, embed_dim), jnp.float32)

    out, h_last = vanilla_rnn_forward(x, w_ih, w_hh, b_ih, b_hh)
    out = jax.block_until_ready(out)
    h_last = jax.block_until_ready(h_last)

    out_ref, h_ref = rnn_reference(x, w_ih, w_hh, b_ih, b_hh)
    assert out.shape == (batch, seq, model_size)
    assert h_last.shape == (batch, model_size)
    assert jnp.allclose(out, out_ref, atol=1e-5, rtol=1e-5)
    assert jnp.allclose(h_last, h_ref, atol=1e-5, rtol=1e-5)

    print("KERNEL_OK")
</pallas_src>

<mosaic_0001>
module attributes {stable_mosaic.version = 11 : i64} {
  func.func @rnn_kernel(%arg0: memref<16x8xf32, #tpu.memory_space<vmem>>, %arg1: memref<8x32xf32, #tpu.memory_space<vmem>>, %arg2: memref<32x32xf32, #tpu.memory_space<vmem>>, %arg3: memref<1x32xf32, #tpu.memory_space<vmem>>, %arg4: memref<2x256xf32, #tpu.memory_space<vmem>>, %arg5: memref<2x32xf32, #tpu.memory_space<vmem>>) attributes {dimension_semantics = [], scalar_prefetch = 0 : i64, scratch_operands = 0 : i64, tpu.core_type = #tpu.core_type<tc>} {
    %c0 = arith.constant 0 : index
    %c0_0 = arith.constant 0 : index
    %0 = vector.load %arg2[%c0, %c0_0] : memref<32x32xf32, #tpu.memory_space<vmem>>, vector<32x32xf32>
    %c0_1 = arith.constant 0 : index
    %c0_2 = arith.constant 0 : index
    %1 = vector.load %arg0[%c0_1, %c0_2] : memref<16x8xf32, #tpu.memory_space<vmem>>, vector<16x8xf32>
    %c0_3 = arith.constant 0 : index
    %c0_4 = arith.constant 0 : index
    %2 = vector.load %arg1[%c0_3, %c0_4] : memref<8x32xf32, #tpu.memory_space<vmem>>, vector<8x32xf32>
    %cst = arith.constant dense<0.000000e+00> : vector<16x32xf32>
    %3 = tpu.matmul %1, %2, %cst {dimension_numbers = #tpu.dot_dimension_numbers<[1], [0], [0], [1], [0, 0, 1, 1], [], []>} : vector<16x8xf32>, vector<8x32xf32>, vector<16x32xf32> -> vector<16x32xf32>
    %c0_5 = arith.constant 0 : index
    %c0_6 = arith.constant 0 : index
    %4 = vector.load %arg3[%c0_5, %c0_6] : memref<1x32xf32, #tpu.memory_space<vmem>>, vector<1x32xf32>
    %5 = vector.broadcast %4 : vector<1x32xf32> to vector<16x32xf32>
    %6 = arith.addf %3, %5 : vector<16x32xf32>
    %7 = vector.extract_strided_slice %6 {offsets = [0, 0], sizes = [2, 32], strides = [1, 1]} : vector<16x32xf32> to vector<2x32xf32>
    %8 = math.tanh %7 : vector<2x32xf32>
    %c0_7 = arith.constant 0 : index
    %c0_8 = arith.constant 0 : index
    %9 = vector.load %arg4[%c0_7, %c0_8] : memref<2x256xf32, #tpu.memory_space<vmem>>, vector<2x32xf32>
    tpu.vector_store %arg4[%c0_7, %c0_8], %8 {strides = array<i32>} : memref<2x256xf32, #tpu.memory_space<vmem>>, vector<2x32xf32>,
    %10 = vector.extract_strided_slice %6 {offsets = [2, 0], sizes = [2, 32], strides = [1, 1]} : vector<16x32xf32> to vector<2x32xf32>
    %cst_9 = arith.constant dense<0.000000e+00> : vector<2x32xf32>
    %11 = tpu.matmul %8, %0, %cst_9 {dimension_numbers = #tpu.dot_dimension_numbers<[1], [0], [0], [1], [0, 0, 1, 1], [], []>} : vector<2x32xf32>, vector<32x32xf32>, vector<2x32xf32> -> vector<2x32xf32>
    %12 = arith.addf %10, %11 : vector<2x32xf32>
    %13 = math.tanh %12 : vector<2x32xf32>
    %c0_10 = arith.constant 0 : index
    %c32 = arith.constant 32 : index
    %14 = vector.load %arg4[%c0_10, %c32] : memref<2x256xf32, #tpu.memory_space<vmem>>, vector<2x32xf32>
    tpu.vector_store %arg4[%c0_10, %c32], %13 {strides = array<i32>} : memref<2x256xf32, #tpu.memory_space<vmem>>, vector<2x32xf32>,
    %15 = vector.extract_strided_slice %6 {offsets = [4, 0], sizes = [2, 32], strides = [1, 1]} : vector<16x32xf32> to vector<2x32xf32>
    %cst_11 = arith.constant dense<0.000000e+00> : vector<2x32xf32>
    %16 = tpu.matmul %13, %0, %cst_11 {dimension_numbers = #tpu.dot_dimension_numbers<[1], [0], [0], [1], [0, 0, 1, 1], [], []>} : vector<2x32xf32>, vector<32x32xf32>, vector<2x32xf32> -> vector<2x32xf32>
    %17 = arith.addf %15, %16 : vector<2x32xf32>
    %18 = math.tanh %17 : vector<2x32xf32>
    %c0_12 = arith.constant 0 : index
    %c64 = arith.constant 64 : index
    %19 = vector.load %arg4[%c0_12, %c64] : memref<2x256xf32, #tpu.memory_space<vmem>>, vector<2x32xf32>
    tpu.vector_store %arg4[%c0_12, %c64], %18 {strides = array<i32>} : memref<2x256xf32, #tpu.memory_space<vmem>>, vector<2x32xf32>,
    %20 = vector.extract_strided_slice %6 {offsets = [6, 0], sizes = [2, 32], strides = [1, 1]} : vector<16x32xf32> to vector<2x32xf32>
    %cst_13 = arith.constant dense<0.000000e+00> : vector<2x32xf32>
    %21 = tpu.matmul %18, %0, %cst_13 {dimension_numbers = #tpu.dot_dimension_numbers<[1], [0], [0], [1], [0, 0, 1, 1], [], []>} : vector<2x32xf32>, vector<32x32xf32>, vector<2x32xf32> -> vector<2x32xf32>
    %22 = arith.addf %20, %21 : vector<2x32xf32>
    %23 = math.tanh %22 : vector<2x32xf32>
    %c0_14 = arith.constant 0 : index
    %c96 = arith.constant 96 : index
    %24 = vector.load %arg4[%c0_14, %c96] : memref<2x256xf32, #tpu.memory_space<vmem>>, vector<2x32xf32>
    tpu.vector_store %arg4[%c0_14, %c96], %23 {strides = array<i32>} : memref<2x256xf32, #tpu.memory_space<vmem>>, vector<2x32xf32>,
    %25 = vector.extract_strided_slice %6 {offsets = [8, 0], sizes = [2, 32], strides = [1, 1]} : vector<16x32xf32> to vector<2x32xf32>
    %cst_15 = arith.constant dense<0.000000e+00> : vector<2x32xf32>
    %26 = tpu.matmul %23, %0, %cst_15 {dimension_numbers = #tpu.dot_dimension_numbers<[1], [0], [0], [1], [0, 0, 1, 1], [], []>} : vector<2x32xf32>, vector<32x32xf32>, vector<2x32xf32> -> vector<2x32xf32>
    %27 = arith.addf %25, %26 : vector<2x32xf32>
    %28 = math.tanh %27 : vector<2x32xf32>
    %c0_16 = arith.constant 0 : index
    %c128 = arith.constant 128 : index
    %29 = vector.load %arg4[%c0_16, %c128] : memref<2x256xf32, #tpu.memory_space<vmem>>, vector<2x32xf32>
    tpu.vector_store %arg4[%c0_16, %c128], %28 {strides = array<i32>} : memref<2x256xf32, #tpu.memory_space<vmem>>, vector<2x32xf32>,
    %30 = vector.extract_strided_slice %6 {offsets = [10, 0], sizes = [2, 32], strides = [1, 1]} : vector<16x32xf32> to vector<2x32xf32>
    %cst_17 = arith.constant dense<0.000000e+00> : vector<2x32xf32>
    %31 = tpu.matmul %28, %0, %cst_17 {dimension_numbers = #tpu.dot_dimension_numbers<[1], [0], [0], [1], [0, 0, 1, 1], [], []>} : vector<2x32xf32>, vector<32x32xf32>, vector<2x32xf32> -> vector<2x32xf32>
    %32 = arith.addf %30, %31 : vector<2x32xf32>
    %33 = math.tanh %32 : vector<2x32xf32>
    %c0_18 = arith.constant 0 : index
    %c160 = arith.constant 160 : index
    %34 = vector.load %arg4[%c0_18, %c160] : memref<2x256xf32, #tpu.memory_space<vmem>>, vector<2x32xf32>
    tpu.vector_store %arg4[%c0_18, %c160], %33 {strides = array<i32>} : memref<2x256xf32, #tpu.memory_space<vmem>>, vector<2x32xf32>,
    %35 = vector.extract_strided_slice %6 {offsets = [12, 0], sizes = [2, 32], strides = [1, 1]} : vector<16x32xf32> to vector<2x32xf32>
    %cst_19 = arith.constant dense<0.000000e+00> : vector<2x32xf32>
    %36 = tpu.matmul %33, %0, %cst_19 {dimension_numbers = #tpu.dot_dimension_numbers<[1], [0], [0], [1], [0, 0, 1, 1], [], []>} : vector<2x32xf32>, vector<32x32xf32>, vector<2x32xf32> -> vector<2x32xf32>
    %37 = arith.addf %35, %36 : vector<2x32xf32>
    %38 = math.tanh %37 : vector<2x32xf32>
    %c0_20 = arith.constant 0 : index
    %c192 = arith.constant 192 : index
    %39 = vector.load %arg4[%c0_20, %c192] : memref<2x256xf32, #tpu.memory_space<vmem>>, vector<2x32xf32>
    tpu.vector_store %arg4[%c0_20, %c192], %38 {strides = array<i32>} : memref<2x256xf32, #tpu.memory_space<vmem>>, vector<2x32xf32>,
    %40 = vector.extract_strided_slice %6 {offsets = [14, 0], sizes = [2, 32], strides = [1, 1]} : vector<16x32xf32> to vector<2x32xf32>
    %cst_21 = arith.constant dense<0.000000e+00> : vector<2x32xf32>
    %41 = tpu.matmul %38, %0, %cst_21 {dimension_numbers = #tpu.dot_dimension_numbers<[1], [0], [0], [1], [0, 0, 1, 1], [], []>} : vector<2x32xf32>, vector<32x32xf32>, vector<2x32xf32> -> vector<2x32xf32>
    %42 = arith.addf %40, %41 : vector<2x32xf32>
    %43 = math.tanh %42 : vector<2x32xf32>
    %c0_22 = arith.constant 0 : index
    %c224 = arith.constant 224 : index
    %44 = vector.load %arg4[%c0_22, %c224] : memref<2x256xf32, #tpu.memory_space<vmem>>, vector<2x32xf32>
    tpu.vector_store %arg4[%c0_22, %c224], %43 {strides = array<i32>} : memref<2x256xf32, #tpu.memory_space<vmem>>, vector<2x32xf32>,
    %c0_23 = arith.constant 0 : index
    %c0_24 = arith.constant 0 : index
    %45 = vector.load %arg5[%c0_23, %c0_24] : memref<2x32xf32, #tpu.memory_space<vmem>>, vector<2x32xf32>
    tpu.vector_store %arg5[%c0_23, %c0_24], %43 {strides = array<i32>} : memref<2x32xf32, #tpu.memory_space<vmem>>, vector<2x32xf32>,
    return
  }
}

</mosaic_0001>

<bundles_post_ra>
// kernel: vanilla_rnn_forward.1
= control target key start
LH: loop header
LB: loop body
LE: loop exit
PB: predicated region body
PF: predicated region fallthrough
CT: control target
= control target key end

     0   :  { %vm34_vm0 = vcmask 64512   ;;  %s1149_s0 = inlined_call_operand.vmem [shape: f32[16,8], index: 0, kind: input, shape index: {}]   ;;  %s1150_s1 = inlined_call_operand.vmem [shape: f32[8,32], index: 1, kind: input, shape index: {}]   ;;  %s1151_s2 = inlined_call_operand.vmem [shape: f32[32,32], index: 2, kind: input, shape index: {}]   ;;  %s1152_s3 = inlined_call_operand.vmem [shape: f32[1,32], index: 3, kind: input, shape index: {}]   ;;  %s1153_s4 = inlined_call_operand.vmem [shape: f32[2,256], index: 4, kind: output, shape index: {0}]   ;;  %s1154_s5 = inlined_call_operand.hbm [shape: f32[2,32], index: 5, kind: output, shape index: {1}]  }
   0x1   :  { %v26_v0 = vld [vmem:[%s1150_s1] sm:$0xff]  ;;  %v25_v2 = vld [vmem:[%s1149_s0 + $0x8] sm:$0xff] }
   0x2   :  { %v24_v1 = vld [vmem:[%s1149_s0] sm:$0xff]  ;;  %815 = vmatprep.subr.mxu0 %v26_v0 }
   0x3   :  { %817 = vmatprep.mubr.msk.f32.mxu0 %vm34_vm0, %v24_v1 }
   0x4   :  { %11 = vsyncpa [#allocation3], 0  ;;  %816 = vmatpush3.msra.mxu0 %v26_v0  ;;  %v991_v3 = vld [vmem:[%s1151_s2 + $0x18] sm:$0xff]  ;;  %v942_v4 = vmov 0.0   ;;  %v997_v5 = vld [vmem:[%s1151_s2 + $0x10] sm:$0xff]  ;;  %vm943_vm1 = vmmov 0   ;;  %v202_v20 = vlaneseq }
   0x5   :  { %818 = vmatmul.mubr.msk.f32.vlgmr.msra.gmra.mxu0 %vm34_vm0, %v25_v2  ;;  %820 = vmatprep.subr.mxu1 %v942_v4  ;;  %v1007_v6 = vld [vmem:[%s1151_s2 + $0x8] sm:$0xff]  ;;  %v1016_v7 = vld [vmem:[%s1151_s2] sm:$0xff]  ;;  %vm119_vm2 = vcmask 261120   ;;  %vm117_vm3 = vcmask 254976   ;;  %v944_v18 = vmov 1983009808  }
   0x6   :  { %828 = vmatprep.mubr.msk.f32.mxu1 %vm943_vm1, %v942_v4  ;;  %821 = vmatpush3.msra.mxu1 %v991_v3  ;;  %v767_v8 = vld [vmem:[%s1152_s3] ss:$0 sm:$0xff]  ;;  %v200_v19 = vunpack.c.l.s4 %v944_v18  ;;  %v203_v22 = vshrl.u32 %v202_v20, 7  ;;  %s945_s3 = smov 32   ;;  %vm210_vm4 = vcmask 517376   ;;  %s946_s10 = smov 64  }
   0x7   :  { %831 = vmatprep.subr.mxu0 %v942_v4  ;;  %822 = vmatprep.subr.mxu1 %v942_v4  ;;  %vm302_vm5 = vcmask 779776   ;;  %s947_s15 = smov 96   ;;  %vm395_vm6 = vcmask 1042176   ;;  %s948_s22 = smov [#allocation2]   ;;  %vm747_vm7 = vcmask 261126  }
   0x8   :  { %832 = vmatpush3.msra.mxu0 %v991_v3  ;;  %823 = vmatpush3.msra.mxu1 %v997_v5  ;;  %v201_v21 = vunpack.c.0.s8 %v200_v19  ;;  %s757_s23 = sshll.u32 %s948_s22, 4  ;;  %s758_s23 = int_to_ptr.vmem [resolvable:$true] %s757_s23 }
   0x9   :  { %833 = vmatprep.subr.mxu0 %v942_v4  ;;  %824 = vmatprep.subr.mxu1 %v942_v4  ;;  %s920_s24 = scalar_lea.vmem %s758_s23, 32  ;;  %p925_p1 = scmp.lt.s32.totalorder %s758_s23, %s758_s23 }
   0xa   :  { %834 = vmatpush3.msra.mxu0 %v997_v5  ;;  %825 = vmatpush3.msra.mxu1 %v1007_v6  ;;  %v1054_v23 = vsub.s32 %v201_v21, %v203_v22  ;;  %p921_p0 = scmp.ne.s32.totalorder %s758_s23, %s920_s24  ;;  %p926_p2 = scmp.lt.s32.totalorder %s920_s24, %s920_s24 }
   0xb   :  { %835 = vmatprep.subr.mxu0 %v942_v4  ;;  %826 = vmatprep.subr.mxu1 %v942_v4 }
   0xc   :  { %836 = vmatpush3.msra.mxu0 %v1007_v6  ;;  %827 = vmatpush3.msra.mxu1 %v1016_v7  ;;  %p927_p3 = por %p926_p2, %p925_p1 }
   0xd   :  { %837 = vmatprep.subr.mxu0 %v942_v4  ;;  %839 = vmatprep.mubr.msk.f32.mxu0 %vm943_vm1, %v942_v4 }
   0xe   :  { %838 = vmatpush3.msra.mxu0 %v1016_v7  ;;  %842 = vmatprep.subr.mxu1 %v942_v4  ;;  %p928_p4 = pnand %p927_p3, %p921_p0 }
   0xf   :  { %853 = vmatprep.subr.mxu0 %v942_v4 }
  0xc5   :  { %v819_v9 = vpop.f32.mrf.mxu0 }
  0xc6   :  { %v1033_v10 = vadd.f32 %v819_v9, %v767_v8 }
  0xc7   :  { %v107_v11 = vpop.f32.mrf.mxu0 }
  0xc8   :  { %v1035_v12 = vadd.f32 %v767_v8, %v107_v11 }
  0xca   :  { %904 = vtanh.f32 %v1035_v12 }
  0xd7   :  { %v905_v13 = vpop.eup %904 }
  0xd8   :  { %829 = vmatmul.mubr.msk.f32.vlgmr.msra.gmra.mxu1 %vm119_vm2, %v905_v13  ;;  %118 = vst.msk [vmem:[%s1153_s4] sm:$0x3] %vm117_vm3, %v905_v13 }
  0xd9   :  { %843 = vmatpush3.msra.mxu1 %v991_v3  ;;  %850 = vmatprep.mubr.msk.f32.mxu1 %vm943_vm1, %v942_v4 }
  0xda   :  { %844 = vmatprep.subr.mxu1 %v942_v4 }
  0xdb   :  { %845 = vmatpush3.msra.mxu1 %v997_v5 }
  0xdc   :  { %846 = vmatprep.subr.mxu1 %v942_v4 }
  0xdd   :  { %847 = vmatpush3.msra.mxu1 %v1007_v6 }
  0xde   :  { %848 = vmatprep.subr.mxu1 %v942_v4 }
  0xdf   :  { %849 = vmatpush3.msra.mxu1 %v1016_v7 }
  0xe0   :  { %864 = vmatprep.subr.mxu1 %v942_v4 }
 0x198   :  { %v189_v14 = vpop.f32.mrf.mxu1 }
 0x199   :  { %v194_v15 = vrot.slane %v189_v14, 6 }
 0x19a   :  { %v830_v16 = vpop.f32.mrf.mxu1 }
 0x19b   :  { %v196_v17 = vadd.f32 %v194_v15, %v1035_v12 }
 0x19d   :  { %906 = vtanh.f32 %v196_v17 }
 0x1aa   :  { %v907_v24 = vpop.eup %906 }
 0x1ab   :  { %v212_v25 = vrot.slane %v907_v24, 2  ;;  %v205_v26 = vrot.slane %v907_v24, %v1054_v23 }
 0x1ad   :  { %840 = vmatmul.mubr.msk.f32.vlgmr.msra.gmra.mxu0 %vm119_vm2, %v212_v25  ;;  %v206_v27 = vcombine.high %v205_v26, %v205_v26 }
 0x1ae   :  { %854 = vmatpush3.msra.mxu0 %v991_v3  ;;  %861 = vmatprep.mubr.msk.f32.mxu0 %vm943_vm1, %v942_v4 }
 0x1af   :  { %207 = vrot.lane.b32.xlu0 %v206_v27, %s945_s3  ;;  %855 = vmatprep.subr.mxu0 %v942_v4 }
 0x1b0   :  { %856 = vmatpush3.msra.mxu0 %v997_v5 }
 0x1b1   :  { %857 = vmatprep.subr.mxu0 %v942_v4 }
 0x1b2   :  { %858 = vmatpush3.msra.mxu0 %v1007_v6 }
 0x1b3   :  { %859 = vmatprep.subr.mxu0 %v942_v4 }
 0x1b4   :  { %860 = vmatpush3.msra.mxu0 %v1016_v7 }
 0x1b5   :  { %875 = vmatprep.subr.mxu0 %v942_v4 }
 0x221   :  { %v208_v28 = vpop.permute.xlu0 %207 }
 0x222   :  { %211 = vst.msk [vmem:[%s1153_s4] sm:$0x3] %vm210_vm4, %v208_v28 }
 0x26d   :  { %v281_v29 = vpop.f32.mrf.mxu0 }
 0x26e   :  { %v286_v30 = vrot.slane %v281_v29, 4 }
 0x26f   :  { %v841_v31 = vpop.f32.mrf.mxu0 }
 0x270   :  { %v288_v32 = vadd.f32 %v286_v30, %v1035_v12 }
 0x272   :  { %908 = vtanh.f32 %v288_v32 }
 0x27f   :  { %v909_v33 = vpop.eup %908 }
 0x280   :  { %v304_v34 = vrot.slane %v909_v33, 4  ;;  %v291_v35 = vcombine.high %v909_v33, %v909_v33 }
 0x282   :  { %851 = vmatmul.mubr.msk.f32.vlgmr.msra.gmra.mxu1 %vm119_vm2, %v304_v34  ;;  %v298_v36 = vrot.slane %v291_v35, %v1054_v23 }
 0x283   :  { %865 = vmatpush3.msra.mxu1 %v991_v3  ;;  %872 = vmatprep.mubr.msk.f32.mxu1 %vm943_vm1, %v942_v4 }
 0x284   :  { %299 = vrot.lane.b32.xlu1 %v298_v36, %s946_s10  ;;  %866 = vmatprep.subr.mxu1 %v942_v4 }
 0x285   :  { %867 = vmatpush3.msra.mxu1 %v997_v5 }
 0x286   :  { %868 = vmatprep.subr.mxu1 %v942_v4 }
 0x287   :  { %869 = vmatpush3.msra.mxu1 %v1007_v6 }
 0x288   :  { %870 = vmatprep.subr.mxu1 %v942_v4 }
 0x289   :  { %871 = vmatpush3.msra.mxu1 %v1016_v7 }
 0x28a   :  { %886 = vmatprep.subr.mxu1 %v942_v4 }
 0x2f6   :  { %v300_v37 = vpop.permute.xlu1 %299 }
 0x2f7   :  { %303 = vst.msk [vmem:[%s1153_s4] sm:$0x3] %vm302_vm5, %v300_v37 }
 0x342   :  { %v373_v38 = vpop.f32.mrf.mxu1 }
 0x343   :  { %v378_v39 = vrot.slane %v373_v38, 2 }
 0x344   :  { %v852_v40 = vpop.f32.mrf.mxu1 }
 0x345   :  { %v380_v41 = vadd.f32 %v378_v39, %v1035_v12 }
 0x347   :  { %910 = vtanh.f32 %v380_v41 }
 0x354   :  { %v911_v42 = vpop.eup %910 }
 0x355   :  { %v397_v43 = vrot.slane %v911_v42, 6  ;;  %v383_v52 = vcombine.high %v911_v42, %v911_v42 }
 0x357   :  { %862 = vmatmul.mubr.msk.f32.vlgmr.msra.gmra.mxu0 %vm119_vm2, %v397_v43  ;;  %v390_v57 = vrot.slane %v383_v52, %v1054_v23 }
 0x358   :  { %876 = vmatpush3.msra.mxu0 %v991_v3  ;;  %883 = vmatprep.mubr.msk.f32.mxu0 %vm943_vm1, %v942_v4 }
 0x359   :  { %877 = vmatprep.subr.mxu0 %v942_v4  ;;  %v391_v58 = vcombine.high %v390_v57, %v390_v57 }
 0x35a   :  { %878 = vmatpush3.msra.mxu0 %v997_v5 }
 0x35b   :  { %879 = vmatprep.subr.mxu0 %v942_v4 }
 0x35c   :  { %880 = vmatpush3.msra.mxu0 %v1007_v6 }
 0x35d   :  { %881 = vmatprep.subr.mxu0 %v942_v4 }
 0x35e   :  { %882 = vmatpush3.msra.mxu0 %v1016_v7 }
 0x417   :  { %v466_v44 = vpop.f32.mrf.mxu0 }
 0x418   :  { %v470_v45 = vadd.f32 %v466_v44, %v1033_v10 }
 0x419   :  { %v863_v46 = vpop.f32.mrf.mxu0 }
 0x41a   :  { %912 = vtanh.f32 %v470_v45 }
 0x427   :  { %v913_v47 = vpop.eup %912 }
 0x428   :  { %472 = vst.msk [vmem:[%s1153_s4 + $0x2] sm:$0x3] %vm117_vm3, %v913_v47  ;;  %873 = vmatmul.mubr.msk.f32.vlgmr.msra.gmra.mxu1 %vm119_vm2, %v913_v47 }
 0x429   :  { %887 = vmatpush3.msra.mxu1 %v991_v3  ;;  %894 = vmatprep.mubr.msk.f32.mxu1 %vm943_vm1, %v942_v4 }
 0x42a   :  { %888 = vmatprep.subr.mxu1 %v942_v4 }
 0x42b   :  { %889 = vmatpush3.msra.mxu1 %v997_v5 }
 0x42c   :  { %890 = vmatprep.subr.mxu1 %v942_v4 }
 0x42d   :  { %891 = vmatpush3.msra.mxu1 %v1007_v6 }
 0x42e   :  { %892 = vmatprep.subr.mxu1 %v942_v4 }
 0x42f   :  { %893 = vmatpush3.msra.mxu1 %v1016_v7 }
 0x4e8   :  { %v542_v48 = vpop.f32.mrf.mxu1 }
 0x4e9   :  { %v547_v49 = vrot.slane %v542_v48, 6 }
 0x4ea   :  { %v874_v50 = vpop.f32.mrf.mxu1 }
 0x4eb   :  { %v549_v51 = vadd.f32 %v547_v49, %v1033_v10 }
 0x4ed   :  { %914 = vtanh.f32 %v549_v51 }
 0x4fa   :  { %v915_v53 = vpop.eup %914 }
 0x4fb   :  { %v564_v54 = vrot.slane %v915_v53, 2  ;;  %v558_v55 = vrot.slane %v915_v53, %v1054_v23 }
 0x4fd   :  { %884 = vmatmul.mubr.msk.f32.vlgmr.msra.gmra.mxu0 %vm119_vm2, %v564_v54  ;;  %v559_v56 = vcombine.high %v558_v55, %v558_v55 }
 0x4ff   :  { %560 = vrot.lane.b32.xlu0 %v559_v56, %s945_s3 }
 0x503   :  { %392 = vrot.lane.b32.xlu0 %v391_v58, %s947_s15 }
 0x571   :  { %v561_v59 = vpop.permute.xlu0 %560 }
 0x572   :  { %563 = vst.msk [vmem:[%s1153_s4 + $0x2] sm:$0x3] %vm210_vm4, %v561_v59 }
 0x575   :  { %v393_v60 = vpop.permute.xlu0 %392 }
 0x576   :  { %396 = vst.msk [vmem:[%s1153_s4] sm:$0x3] %vm395_vm6, %v393_v60 }
 0x5bd   :  { %v633_v61 = vpop.f32.mrf.mxu0 }
 0x5be   :  { %v638_v62 = vrot.slane %v633_v61, 4 }
 0x5bf   :  { %v885_v63 = vpop.f32.mrf.mxu0 }
 0x5c0   :  { %v640_v0 = vadd.f32 %v638_v62, %v1033_v10 }
 0x5c2   :  { %916 = vtanh.f32 %v640_v0 }
 0x5cf   :  { %v917_v1 = vpop.eup %916 }
 0x5d0   :  { %v655_v2 = vrot.slane %v917_v1, 4  ;;  %v643_v3 = vcombine.high %v917_v1, %v917_v1 }
 0x5d2   :  { %895 = vmatmul.mubr.msk.f32.vlgmr.msra.gmra.mxu1 %vm119_vm2, %v655_v2  ;;  %v650_v4 = vrot.slane %v643_v3, %v1054_v23 }
 0x5d4   :  { %651 = vrot.lane.b32.xlu1 %v650_v4, %s946_s10 }
 0x646   :  { %v652_v5 = vpop.permute.xlu1 %651 }
 0x647   :  { %654 = vst.msk [vmem:[%s1153_s4 + $0x2] sm:$0x3] %vm302_vm5, %v652_v5 }
 0x692   :  { %v724_v6 = vpop.f32.mrf.mxu1 }
 0x693   :  { %v729_v7 = vrot.slane %v724_v6, 2 }
 0x694   :  { %v896_v8 = vpop.f32.mrf.mxu1 }
 0x695   :  { %v731_v9 = vadd.f32 %v729_v7, %v1033_v10 }
 0x697   :  { %918 = vtanh.f32 %v731_v9 }
 0x6a4   :  { %v919_v11 = vpop.eup %918 }
 0x6a5   :  { %v734_v12 = vcombine.high %v919_v11, %v919_v11  ;;  %748 = vst.msk [vmem:[#allocation2 - $0x6] sm:$0xc0] %vm747_vm7, %v919_v11 }
 0x6a6   :  { %931 = shalt.err (!%p928_p4)
}
 0x6a7   :  { %760 = dma.vmem_to_hbm [thread:$0]  %s758_s23, 32, %s1154_s5, [#allocation3]   ;;  %v741_v10 = vrot.slane %v734_v12, %v1054_v23 }
 0x6a9   :  { %v742_v13 = vcombine.high %v741_v10, %v741_v10 }
 0x6ab   :  { %743 = vrot.lane.b32.xlu1 %v742_v13, %s947_s15 }
 0x71d   :  { %v744_v14 = vpop.permute.xlu1 %743 }
 0x71e   :  { %746 = vst.msk [vmem:[%s1153_s4 + $0x2] sm:$0x3] %vm395_vm6, %v744_v14 }
 0x71f   :  { %940 = dma.done.wait [#allocation3], 32  }
 0x720   :  { %941 = vsyncadd [#allocation3], 4294967264 }
 0x721   :  { %766 = vsyncpa [#allocation3], 1 }

</bundles_post_ra>
